<compile_context>
chip_gen: v7x
topology: tpu7x:2x2x1
jax: 0.10.0
libtpu: 0.0.40
codegen_flags: <defaults>
</compile_context>

<pallas_src>
import jax
import jax.numpy as jnp
from jax.experimental import pallas as pl
from jax.experimental.pallas import tpu as pltpu


ROWS_PER_STEP = 128           # tokens gathered per grid step (G)
VMEM_TABLE_BUDGET = 24 << 20  # resident-table cap; keeps 2x buffering well under v7x 64 MiB
MIN_PALLAS_TOKENS = 1024      # below this, XLA's native gather beats launch overhead


def _emb_onehot_kernel(ids_ref, table_ref, out_ref):
    """One grid step: gather G embedding rows via a one-hot MXU matmul.

    ids_ref   : (G, 1)      int32 token ids for this block (VMEM)
    table_ref : (V_pad, E)  embedding table, VMEM-resident (constant index_map)
    out_ref   : (G, E)      output block
    """
    g = ids_ref.shape[0]
    v_pad = table_ref.shape[0]
    ids = ids_ref[...]                                           # (G, 1), tokens on sublanes
    vocab = jax.lax.broadcasted_iota(jnp.int32, (g, v_pad), 1)   # (G, V_pad), vocab on lanes
    one_hot = (ids == vocab).astype(table_ref.dtype)             # (G, V_pad)
    # HIGHEST precision keeps the f32 one-hot * f32 table gather (effectively) exact
    # instead of bf16-truncated; bf16 tables are unaffected (native MXU dtype).
    out_ref[...] = jnp.dot(
        one_hot,
        table_ref[...],
        preferred_element_type=jnp.float32,
        precision=jax.lax.Precision.HIGHEST,
    ).astype(out_ref.dtype)


def word_embedding_forward(x_idx, emb_weight, *, force_pallas=False):
    """x_idx: (B, T) int32 token ids in [0, ntoken]; emb_weight: (ntoken+1, E).

    Returns (B, T, E) == nn.Embedding(ntoken+1, E, padding_idx=ntoken)(x);
    dropout is identity (eval / p=0)."""
    B, T = x_idx.shape
    V, E = emb_weight.shape
    G = ROWS_PER_STEP
    N = B * T

    V_pad = ((V + 127) // 128) * 128
    table_bytes = V_pad * E * emb_weight.dtype.itemsize

    use_pallas = (table_bytes <= VMEM_TABLE_BUDGET) and (
        force_pallas or N >= MIN_PALLAS_TOKENS)
    if not use_pallas:
        # Tiny token counts (launch-overhead dominated) or tables too large to be
        # VMEM-resident: use XLA's native gather.
        return emb_weight[x_idx]

    n_blocks = pl.cdiv(N, G)
    N_pad = n_blocks * G

    flat_idx = x_idx.reshape(N).astype(jnp.int32)
    if N_pad != N:
        # Pad with the padding index (zero row); padded outputs are sliced off below.
        flat_idx = jnp.pad(flat_idx, (0, N_pad - N), constant_values=V - 1)
    ids_2d = flat_idx.reshape(N_pad, 1)

    table = emb_weight
    if V_pad != V:
        table = jnp.pad(table, ((0, V_pad - V), (0, 0)))  # zero rows, never selected

    out_block_bytes = G * E * emb_weight.dtype.itemsize
    vmem_needed = 2 * (table_bytes + out_block_bytes + G * 4) + (2 << 20)
    vmem_limit = int(min(max(vmem_needed, 32 << 20), 56 << 20))

    out_flat = pl.pallas_call(
        _emb_onehot_kernel,
        out_shape=jax.ShapeDtypeStruct((N_pad, E), emb_weight.dtype),
        grid=(n_blocks,),
        in_specs=[
            pl.BlockSpec((G, 1), lambda i: (i, 0)),        # token-id block
            pl.BlockSpec((V_pad, E), lambda i: (0, 0)),    # table: fetched once, stays resident
        ],
        out_specs=pl.BlockSpec((G, E), lambda i: (i, 0)),
        compiler_params=pltpu.CompilerParams(
            dimension_semantics=("parallel",),             # token blocks independent (v7x megacore)
            vmem_limit_bytes=vmem_limit,
        ),
    )(ids_2d, table)

    return out_flat[:N].reshape(B, T, E)


def word_embedding_reference(x_idx, emb_weight):
    """Pure-JAX reference: plain embedding gather."""
    return emb_weight[x_idx]


if __name__ == "__main__":
    # Module config: WordEmbedding(ntoken=100, emb_dim=128, dropout=0.0, op='')
    ntoken, emb_dim = 100, 128
    B, T = 2, 128   # N = 256 tokens -> 2 grid blocks of 128 (both v7x TCs get work)

    key = jax.random.PRNGKey(0)
    k_w, k_x = jax.random.split(key)

    # Embedding table; row `ntoken` is the padding row (zeros), as nn.Embedding
    # with padding_idx=ntoken keeps it.
    emb_weight = jax.random.normal(k_w, (ntoken + 1, emb_dim), jnp.float32)
    emb_weight = emb_weight.at[ntoken].set(0.0)

    x = jax.random.randint(k_x, (B, T), 0, ntoken + 1, dtype=jnp.int32)
    x = x.at[0, -1].set(ntoken)  # make sure the padding index is exercised

    out = jax.block_until_ready(
        word_embedding_forward(x, emb_weight, force_pallas=True))
    ref = jax.block_until_ready(word_embedding_reference(x, emb_weight))

    assert out.shape == (B, T, emb_dim), out.shape
    assert jnp.allclose(out, ref, rtol=1e-5, atol=1e-5), (
        f"mismatch: max abs err {jnp.max(jnp.abs(out - ref))}")
    # padding row must be exactly zero
    assert jnp.all(out[0, -1] == 0.0)

    print("KERNEL_OK")
</pallas_src>

<mosaic_0001>
module attributes {stable_mosaic.version = 11 : i64} {
  func.func @_emb_onehot_kernel(%arg0: i32, %arg1: memref<128x1xi32, #tpu.memory_space<vmem>>, %arg2: memref<128x128xf32, #tpu.memory_space<vmem>>, %arg3: memref<128x128xf32, #tpu.memory_space<vmem>>) attributes {dimension_semantics = [#tpu.dimension_semantics<parallel>], iteration_bounds = array<i64: 2>, scalar_prefetch = 0 : i64, scratch_operands = 0 : i64, tpu.core_type = #tpu.core_type<tc>, window_params = [{transform_indices = @transform_0, window_bounds = array<i64: 128, 1>}, {pipeline_mode = #tpu.pipeline_mode<synchronous>, transform_indices = @transform_1, window_bounds = array<i64: 128, 128>}, {transform_indices = @transform_2, window_bounds = array<i64: 128, 128>}]} {
    %c0 = arith.constant 0 : index
    %c0_0 = arith.constant 0 : index
    %0 = vector.load %arg1[%c0, %c0_0] : memref<128x1xi32, #tpu.memory_space<vmem>>, vector<128x1xi32>
    %1 = tpu.iota {dimensions = array<i32: 1>} : vector<128x128xi32>
    %2 = vector.broadcast %0 : vector<128x1xi32> to vector<128x128xi32>
    %3 = arith.cmpi eq, %2, %1 : vector<128x128xi32>
    %4 = arith.extui %3 : vector<128x128xi1> to vector<128x128xi32>
    %5 = arith.sitofp %4 : vector<128x128xi32> to vector<128x128xf32>
    %c0_1 = arith.constant 0 : index
    %c0_2 = arith.constant 0 : index
    %6 = vector.load %arg2[%c0_1, %c0_2] : memref<128x128xf32, #tpu.memory_space<vmem>>, vector<128x128xf32>
    %cst = arith.constant dense<0.000000e+00> : vector<128x128xf32>
    %7 = tpu.matmul %5, %6, %cst {dimension_numbers = #tpu.dot_dimension_numbers<[1], [0], [0], [1], [0, 0, 1, 1], [], []>, precision = #tpu.contract_precision<fp32>} : vector<128x128xf32>, vector<128x128xf32>, vector<128x128xf32> -> vector<128x128xf32>
    %c0_3 = arith.constant 0 : index
    %c0_4 = arith.constant 0 : index
    %8 = vector.load %arg3[%c0_3, %c0_4] : memref<128x128xf32, #tpu.memory_space<vmem>>, vector<128x128xf32>
    tpu.vector_store %arg3[%c0_3, %c0_4], %7 {strides = array<i32>} : memref<128x128xf32, #tpu.memory_space<vmem>>, vector<128x128xf32>,
    return
  }
  func.func @transform_0(%arg0: i32) -> (i32, i32) {
    %c0_i32 = arith.constant 0 : i32
    %c0_i32_0 = arith.constant 0 : i32
    return %arg0, %c0_i32 : i32, i32
  }
  func.func @transform_1(%arg0: i32) -> (i32, i32) {
    %c0_i32 = arith.constant 0 : i32
    %c0_i32_0 = arith.constant 0 : i32
    %c0_i32_1 = arith.constant 0 : i32
    return %c0_i32, %c0_i32_0 : i32, i32
  }
  func.func @transform_2(%arg0: i32) -> (i32, i32) {
    %c0_i32 = arith.constant 0 : i32
    %c0_i32_0 = arith.constant 0 : i32
    return %arg0, %c0_i32 : i32, i32
  }
}

</mosaic_0001>

<bundles_post_ra>
// kernel: tpu_custom_call.1
= control target key start
LH: loop header
LB: loop body
LE: loop exit
PB: predicated region body
PF: predicated region fallthrough
CT: control target
= control target key end

     0   :  { %7 = vsyncpa [#allocation3], 0  ;;  %s3559_s0 = inlined_call_operand.vmem [shape: s32[256,1], index: 0, kind: input, shape index: {}]   ;;  %s3560_s1 = inlined_call_operand.vmem [shape: f32[128,128], index: 1, kind: input, shape index: {}]   ;;  %s3561_s2 = inlined_call_operand.hbm [shape: f32[256,128], index: 2, kind: output, shape index: {}]  }
   0x1   :  { %9 = vsyncpa [#allocation3 + $0x1], 0  ;;  %s2661_s9 = smov 0   ;;  %s2663_s10 = smov 0  }
   0x2   :  { %s2665_s11 = smov 0   ;;  %s2667_s12 = smov 0  }
   0x3 LB: > { %s2682_s13 = sadd.s32 4294967295, %s2638_s12   ;;  %s1653_s14 = sadd.s32 4294967294, %s2638_s12   ;;  %s2638_s12 = sphi %s2667_s12, %s3585_s12   ;;  %s2634_s11 = sphi %s2665_s11, %s3584_s11   ;;  %s2630_s10 = sphi %s2663_s10, %s3583_s10   ;;  %s2626_s9 = sphi %s2661_s9, %s3582_s9  }
   0x4   : > { %s2686_s15 = sadd.s32 1, %s2638_s12   ;;  %s69_s16 = sadd.s32 1, %s2634_s11 }
   0x5   : > { %s66_s17 = ssub.s32 %s2638_s12, %s2686_s15  ;;  %p79_p0 = scmp.ne.s32.totalorder %s2634_s11, %s2630_s10 }
   0x6   : > { %p67_p1 = scmp.eq.s32.totalorder %s66_s17, 0  ;;  %p80_p2 = scmp.eq.s32.totalorder %s2682_s13, 1 }
   0x7   : > { %p85_p3 = scmp.ne.s32.totalorder %s2630_s10, %s2626_s9  ;;  %p86_p4 = scmp.eq.s32.totalorder %s1653_s14, 1 }
   0x8   : > { %s2697_s18 = scalar_select %p67_p1, %s2634_s11, %s69_s16  }
   0x9   : > { %p2699_p5 = por %p80_p2, %p79_p0  ;;  %p2703_p6 = por %p86_p4, %p85_p3 }
   0xa   : > { %p1656_p7 = scmp.ge.s32.totalorder %s2638_s12, 1  ;;  %p116_p8 = scmp.lt.s32.totalorder %s2638_s12, 3 }
   0xc   : > { %p117_p9 = pnand %p1656_p7, %p116_p8 }
   0xe   : > { %120 = sbr.rel (%p117_p9) target bundleno = 493 (0x1ed), region = 28 }
  0x15   : > { %s1658_s21 = sshll.u32 %s2682_s13, 4  ;;  %v259_v0 = vld [vmem:[%s3560_s1] sm:$0xff]  ;;  %v260_v1 = vld [vmem:[%s3560_s1 + $0x8] sm:$0xff]  ;;  %v2719_v2 = vld [vmem:[%s3560_s1 + $0x10] sm:$0xff]  ;;  %v2640_v3 = vmov 0   ;;  %s135_s17 = sand.u32 1, %s2630_s10  }
  0x16   : > { %2575 = vset.pattern.permute.xlu1 %v2640_v3  ;;  %2574 = vset.pattern.permute.xlu0 %v2640_v3  ;;  %p139_p10 = scmp.lt.s32.totalorder %s1658_s21, 31  ;;  %v276_v4 = vand.u32 4294901760, %v259_v0  ;;  %v279_v5 = vand.u32 4294901760, %v260_v1  ;;  %v262_v6 = vld [vmem:[%s3560_s1 + $0x18] sm:$0xff]  ;;  %v282_v7 = vand.u32 4294901760, %v2719_v2  ;;  %v2728_v8 = vld [vmem:[%s3560_s1 + $0x20] sm:$0xff] }
  0x17   : > { %v285_v9 = vand.u32 4294901760, %v262_v6  ;;  %v2733_v10 = vld [vmem:[%s3560_s1 + $0x28] sm:$0xff]  ;;  %v288_v12 = vand.u32 4294901760, %v2728_v8  ;;  %v2744_v15 = vld [vmem:[%s3560_s1 + $0x30] sm:$0xff]  ;;  %v2749_v16 = vld [vmem:[%s3560_s1 + $0x38] sm:$0xff]  ;;  %s1657_s22 = sshll.u32 %s135_s17, 7 }
  0x18   : > { %s3587_s21 = smov (!%p139_p10, %s1658_s21), 31  ;;  %v2735_v11 = vpack.c.bf16 %v279_v5, %v276_v4  ;;  %v291_v13 = vand.u32 4294901760, %v2733_v10  ;;  %v294_v20 = vand.u32 4294901760, %v2744_v15  ;;  %v297_v21 = vand.u32 4294901760, %v2749_v16  ;;  %v2775_v22 = vld [vmem:[%s3560_s1 + $0x40] sm:$0xff]  ;;  %v2780_v23 = vld [vmem:[%s3560_s1 + $0x48] sm:$0xff] }
  0x19   : > { %v2739_v14 = vpack.c.bf16 %v285_v9, %v282_v7  ;;  %s1659_s16 = sshll.u32 %s3587_s21, 3  ;;  %v300_v27 = vand.u32 4294901760, %v2775_v22  ;;  %v303_v28 = vand.u32 4294901760, %v2780_v23  ;;  %v2799_v29 = vld [vmem:[%s3560_s1 + $0x50] sm:$0xff]  ;;  %v2804_v30 = vld [vmem:[%s3560_s1 + $0x58] sm:$0xff]  ;;  %v2809_v31 = vld [vmem:[%s3560_s1 + $0x60] sm:$0xff]  ;;  %v2820_v35 = vsub.f32 %v259_v0, %v276_v4 }
  0x1a   : > { %2355 = vmatprep.subr.bf16.mxu0 %v2735_v11  ;;  %2259 = vmatprep.subr.bf16.mxu1 %v2735_v11  ;;  %s2756_s23 = scalar_lea.vmem %s3559_s0, %s1659_s16  ;;  %v2768_v19 = vpack.c.bf16 %v291_v13, %v288_v12  ;;  %v2792_v26 = vpack.c.bf16 %v297_v21, %v294_v20  ;;  %v2816_v34 = vld [vmem:[%s3560_s1 + $0x68] sm:$0xff]  ;;  %v306_v37 = vand.u32 4294901760, %v2799_v29  ;;  %v309_v38 = vand.u32 4294901760, %v2804_v30  ;;  %v2857_v48 = vld [vmem:[%s3560_s1 + $0x70] sm:$0xff]  ;;  %v2862_v49 = vld [vmem:[%s3560_s1 + $0x78] sm:$0xff]  ;;  %s1729_s21 = sshll.u32 %s2682_s13, 11 }
  0x1b   : > { %2357 = vmatpush3.bf16.msra.mxu0 %v2735_v11  ;;  %2261 = vmatpush3.bf16.msra.mxu1 %v2735_v11  ;;  %v147_v17 = vld [vmem:[%s2756_s23 + $0x10] sm:$0xff]  ;;  %v145_v18 = vld [vmem:[%s2756_s23] sm:$0xff]  ;;  %v148_v24 = vld [vmem:[%s2756_s23 + $0x18] sm:$0xff]  ;;  %v2828_v36 = vpack.c.bf16 %v303_v28, %v300_v27  ;;  %v2832_v39 = vsub.f32 %v260_v1, %v279_v5  ;;  %v312_v40 = vand.u32 4294901760, %v2809_v31  ;;  %v315_v41 = vand.u32 4294901760, %v2816_v34  ;;  %s3510_s27 = scalar_lea.hbm %s3561_s2, %s1729_s21  ;;  %s3518_s13 = scalar_lea.sflag [#allocation3], %s135_s17 }
  0x1c   : > { %2359 = vmatprep.subr.bf16.mxu0 %v2739_v14  ;;  %2263 = vmatprep.subr.bf16.mxu1 %v2739_v14  ;;  %v146_v25 = vld [vmem:[%s2756_s23 + $0x8] sm:$0xff]  ;;  %v149_v33 = vld [vmem:[%s2756_s23 + $0x20] sm:$0xff]  ;;  %v152_v42 = vld [vmem:[%s2756_s23 + $0x38] sm:$0xff]  ;;  %v2839_v44 = vsub.f32 %v2719_v2, %v282_v7  ;;  %v2841_v45 = vsub.f32 %v262_v6, %v285_v9  ;;  %v519_v46 = vand.u32 4294901760, %v2820_v35  ;;  %v2852_v47 = vpack.c.bf16 %v309_v38, %v306_v37  ;;  %s2643_s29 = smov [#allocation2]  }
  0x1d   : > { %170 = vperm.xlu1 %2575, %v147_v17   ;;  %164 = vperm.xlu0 %2574, %v145_v18   ;;  %v150_v32 = vld [vmem:[%s2756_s23 + $0x28] sm:$0xff]  ;;  %v151_v43 = vld [vmem:[%s2756_s23 + $0x30] sm:$0xff]  ;;  %v526_v50 = vand.u32 4294901760, %v2832_v39  ;;  %v2871_v53 = vpack.c.bf16 %v315_v41, %v312_v40  ;;  %v153_v55 = vld [vmem:[%s2756_s23 + $0x40] sm:$0xff]  ;;  %v2882_v59 = vsub.f32 %v2728_v8, %v288_v12  ;;  %v318_v60 = vand.u32 4294901760, %v2857_v48  ;;  %s2580_s30 = sshll.u32 %s2643_s29, 4  ;;  %s2581_s30 = int_to_ptr.vmem [resolvable:$false] %s2580_s30 }
  0x1e   : > { %v533_v51 = vand.u32 4294901760, %v2839_v44  ;;  %v540_v52 = vand.u32 4294901760, %v2841_v45  ;;  %v154_v54 = vld [vmem:[%s2756_s23 + $0x48] sm:$0xff]  ;;  %v321_v61 = vand.u32 4294901760, %v2862_v49  ;;  %v520_v62 = vsub.f32 %v2820_v35, %v519_v46  ;;  %v156_v5 = vld [vmem:[%s2756_s23 + $0x58] sm:$0xff]  ;;  %v155_v6 = vld [vmem:[%s2756_s23 + $0x50] sm:$0xff] }
  0x1f   : > { %2361 = vmatpush3.bf16.msra.mxu0 %v2739_v14  ;;  %2265 = vmatpush3.bf16.msra.mxu1 %v2739_v14  ;;  %v2892_v63 = vsub.f32 %v2733_v10, %v291_v13  ;;  %v527_v0 = vsub.f32 %v2832_v39, %v526_v50  ;;  %v547_v3 = vand.u32 4294901760, %v2882_v59  ;;  %v2907_v9 = vsub.f32 %v2744_v15, %v294_v20  ;;  %s2582_s3 = scalar_lea.vmem %s2581_s30, 4096 }
  0x20   : > { %2363 = vmatprep.subr.bf16.mxu0 %v2768_v19  ;;  %2267 = vmatprep.subr.bf16.mxu1 %v2768_v19  ;;  %v2875_v56 = vpack.c.bf16 %v540_v52, %v533_v51  ;;  %v534_v57 = vsub.f32 %v2839_v44, %v533_v51  ;;  %v541_v58 = vsub.f32 %v2841_v45, %v540_v52  ;;  %v521_v13 = vand.u32 4294901760, %v520_v62  ;;  %v159_v62 = vld [vmem:[%s2756_s23 + $0x70] sm:$0xff] }
  0x21   : > { %173 = vperm.xlu1 %2575, %v148_v24   ;;  %167 = vperm.xlu0 %2574, %v146_v25   ;;  %v554_v4 = vand.u32 4294901760, %v2892_v63  ;;  %v548_v8 = vsub.f32 %v2882_v59, %v547_v3  ;;  %v2912_v10 = vsub.f32 %v2749_v16, %v297_v21  ;;  %v2920_v12 = vpack.c.bf16 %v321_v61, %v318_v60  ;;  %v158_v25 = vld [vmem:[%s2756_s23 + $0x68] sm:$0xff] }
  0x22   : > { %v535_v1 = vand.u32 4294901760, %v534_v57  ;;  %v542_v2 = vand.u32 4294901760, %v541_v58  ;;  %v528_v16 = vand.u32 4294901760, %v527_v0  ;;  %v561_v20 = vand.u32 4294901760, %v2907_v9 }
  0x23   : > { %2365 = vmatpush3.bf16.msra.mxu0 %v2768_v19  ;;  %2269 = vmatpush3.bf16.msra.mxu1 %v2768_v19  ;;  %v2922_v15 = vpack.c.bf16 %v554_v4, %v547_v3  ;;  %v555_v17 = vsub.f32 %v2892_v63, %v554_v4  ;;  %v549_v18 = vand.u32 4294901760, %v548_v8  ;;  %v568_v21 = vand.u32 4294901760, %v2912_v10 }
  0x24   : > { %2367 = vmatprep.subr.bf16.mxu0 %v2792_v26  ;;  %2271 = vmatprep.subr.bf16.mxu1 %v2792_v26  ;;  %v2901_v7 = vpack.c.bf16 %v542_v2, %v535_v1  ;;  %v2938_v51 = vsub.f32 %v2775_v22, %v300_v27  ;;  %v2942_v52 = vpack.c.bf16 %v526_v50, %v519_v46  ;;  %v160_v50 = vld [vmem:[%s2756_s23 + $0x78] sm:$0xff] }
  0x25   : > { %179 = vperm.xlu1 %2575, %v150_v32   ;;  %176 = vperm.xlu0 %2574, %v149_v33   ;;  %v556_v24 = vand.u32 4294901760, %v555_v17  ;;  %v157_v32 = vld [vmem:[%s2756_s23 + $0x60] sm:$0xff]  ;;  %v2931_v33 = vpack.c.bf16 %v568_v21, %v561_v20  ;;  %v2951_v57 = vpack.c.bf16 %v528_v16, %v521_v13  ;;  %v602_v8 = vsub.f32 %v2809_v31, %v312_v40  ;;  %s3489_s23 = scalar_lea.vmem [#allocation2], %s1657_s22 }
  0x26   : > { %v575_v58 = vand.u32 4294901760, %v2938_v51  ;;  %v609_v17 = vsub.f32 %v2816_v34, %v315_v41  ;;  %v623_v31 = vsub.f32 %v2862_v49, %v321_v61  ;;  %v2999_v49 = vpack.c.bf16 %v2832_v39, %v2820_v35  ;;  %s1591_s24 = sshll.u32 %s3489_s23, 4  ;;  %s3512_s24 = int_to_ptr.vmem [resolvable:$true] %s1591_s24 }
  0x27   : > { %2369 = vmatpush3.bf16.msra.mxu0 %v2792_v26  ;;  %2273 = vmatpush3.bf16.msra.mxu1 %v2792_v26  ;;  %v3007_v61 = vpack.c.bf16 %v2892_v63, %v2882_v59  ;;  %v161_v39 = vlaneseq  ;;  %v3562_v63 = vmov 0.0   ;;  %s2576_s28 = scalar_lea.vmem %s3512_s24, 2048  ;;  %p2583_p0 = scmp.lt.s32.totalorder %s3512_s24, %s2581_s30 }
  0x28   : > { %2371 = vmatprep.subr.bf16.mxu0 %v2828_v36  ;;  %2275 = vmatprep.subr.bf16.mxu1 %v2828_v36  ;;  %v576_v1 = vsub.f32 %v2938_v51, %v575_v58  ;;  %v624_v41 = vand.u32 4294901760, %v623_v31  ;;  %p2577_p11 = scmp.ne.s32.totalorder %s3512_s24, %s2576_s28  ;;  %p2584_p1 = scmp.lt.s32.totalorder %s2582_s3, %s2576_s28 }
  0x29   : > { %185 = vperm.xlu1 %2575, %v152_v42   ;;  %182 = vperm.xlu0 %2574, %v151_v43   ;;  %v562_v42 = vsub.f32 %v2907_v9, %v561_v20  ;;  %v569_v43 = vsub.f32 %v2912_v10, %v568_v21  ;;  %v603_v20 = vand.u32 4294901760, %v602_v8  ;;  %v610_v21 = vand.u32 4294901760, %v609_v17 }
  0x2a   : > { %v577_v4 = vand.u32 4294901760, %v576_v1  ;;  %p2578_p12 = pnand %p2577_p11, %p2699_p5  ;;  %p2585_p2 = por %p2584_p1, %p2583_p0 }
  0x2b   : > { %2373 = vmatpush3.bf16.msra.mxu0 %v2828_v36  ;;  %2277 = vmatpush3.bf16.msra.mxu1 %v2828_v36  ;;  %v563_v22 = vand.u32 4294901760, %v562_v42  ;;  %v570_v27 = vand.u32 4294901760, %v569_v43  ;;  %v2989_v40 = vpack.c.bf16 %v610_v21, %v603_v20  ;;  %v611_v42 = vsub.f32 %v609_v17, %v610_v21 }
  0x2c   : > { %2375 = vmatprep.subr.bf16.mxu0 %v2852_v47  ;;  %2279 = vmatprep.subr.bf16.mxu1 %v2852_v47  ;;  %p2579_p13 = pneg %p2578_p12 }
  0x2d   : > { %191 = vperm.xlu1 %2575, %v154_v54   ;;  %188 = vperm.xlu0 %2574, %v153_v55   ;;  %v2944_v54 = vpack.c.bf16 %v556_v24, %v549_v18  ;;  %v581_v55 = vsub.f32 %v2780_v23, %v303_v28  ;;  %v2956_v0 = vpack.c.bf16 %v570_v27, %v563_v22  ;;  %v612_v22 = vand.u32 4294901760, %v611_v42 }
  0x2e   : > { %v588_v23 = vsub.f32 %v2799_v29, %v306_v37  ;;  %v595_v28 = vsub.f32 %v2804_v30, %v309_v38  ;;  %p2586_p3 = pnand %p2585_p2, %p2579_p13 }
  0x2f   : > { %2377 = vmatpush3.bf16.msra.mxu0 %v2852_v47  ;;  %2281 = vmatpush3.bf16.msra.mxu1 %v2852_v47  ;;  %v582_v46 = vand.u32 4294901760, %v581_v55 }
  0x30   : > { %2379 = vmatprep.subr.bf16.mxu0 %v2871_v53  ;;  %2283 = vmatprep.subr.bf16.mxu1 %v2871_v53 }
  0x31   : > { %197 = vperm.xlu1 %2575, %v156_v5   ;;  %194 = vperm.xlu0 %2574, %v155_v6   ;;  %v2967_v2 = vpack.c.bf16 %v582_v46, %v575_v58  ;;  %v583_v3 = vsub.f32 %v581_v55, %v582_v46  ;;  %v589_v5 = vand.u32 4294901760, %v588_v23  ;;  %v596_v6 = vand.u32 4294901760, %v595_v28 }
  0x32   : > { %v625_v46 = vsub.f32 %v623_v31, %v624_v41 }
  0x33   : > { %2381 = vmatpush3.bf16.msra.mxu0 %v2871_v53  ;;  %2285 = vmatpush3.bf16.msra.mxu1 %v2871_v53  ;;  %v584_v29 = vand.u32 4294901760, %v583_v3  ;;  %v2971_v37 = vpack.c.bf16 %v596_v6, %v589_v5  ;;  %v590_v30 = vsub.f32 %v588_v23, %v589_v5  ;;  %v597_v38 = vsub.f32 %v595_v28, %v596_v6 }
  0x34   : > { %2383 = vmatprep.subr.bf16.mxu0 %v2920_v12  ;;  %2287 = vmatprep.subr.bf16.mxu1 %v2920_v12  ;;  %v626_v1 = vand.u32 4294901760, %v625_v46  ;;  %v3011_v3 = vpack.c.bf16 %v2912_v10, %v2907_v9  ;;  %v3016_v5 = vpack.c.bf16 %v595_v28, %v588_v23  ;;  %v3018_v6 = vpack.c.bf16 %v609_v17, %v602_v8 }
  0x35   : > { %203 = vperm.xlu1 %2575, %v158_v25   ;;  %200 = vperm.xlu0 %2574, %v157_v32   ;;  %v2976_v13 = vpack.c.bf16 %v584_v29, %v577_v4  ;;  %v591_v16 = vand.u32 4294901760, %v590_v30  ;;  %v598_v18 = vand.u32 4294901760, %v597_v38  ;;  %v604_v25 = vsub.f32 %v602_v8, %v603_v20 }
  0x36   : > { %v616_v32 = vsub.f32 %v2857_v48, %v318_v60  ;;  %v3003_v60 = vpack.c.bf16 %v2841_v45, %v2839_v44  ;;  %v3014_v4 = vpack.c.bf16 %v581_v55, %v2938_v51  ;;  %v3022_v44 = vand.u32 127, %v161_v39 }
  0x37   : > { %2385 = vmatpush3.bf16.msra.mxu0 %v2920_v12  ;;  %2289 = vmatpush3.bf16.msra.mxu1 %v2920_v12  ;;  %v2981_v24 = vpack.c.bf16 %v598_v18, %v591_v16  ;;  %v605_v43 = vand.u32 4294901760, %v604_v25 }
  0x38   : > { %2387 = vmatprep.subr.bf16.mxu0 %v2942_v52  ;;  %2291 = vmatprep.subr.bf16.mxu1 %v2951_v57  ;;  %v617_v34 = vand.u32 4294901760, %v616_v32  ;;  %v3020_v35 = vpack.c.bf16 %v623_v31, %v616_v32 }
  0x39   : > { %209 = vperm.xlu1 %2575, %v160_v50   ;;  %206 = vperm.xlu0 %2574, %v159_v62   ;;  %v2993_v50 = vpack.c.bf16 %v612_v22, %v605_v43 }
  0x3a   : > { %v2991_v27 = vpack.c.bf16 %v624_v41, %v617_v34  ;;  %v618_v58 = vsub.f32 %v616_v32, %v617_v34 }
  0x3c   : > { %v619_v62 = vand.u32 4294901760, %v618_v58 }
  0x3e   : > { %v2995_v48 = vpack.c.bf16 %v626_v1, %v619_v62 }
  0x9c   : > { %v3024_v45 = vpop.permute.xlu1 %170  ;;  %v3026_v59 = vpop.permute.xlu0 %164 }
  0x9d   : > { %vm213_vm0 = vcmp.eq.s32.totalorder %v3024_v45, %v3022_v44  ;;  %vm211_vm1 = vcmp.eq.s32.totalorder %v3026_v59, %v3022_v44 }
  0x9e   : > { %v1662_v9 = vsel %vm213_vm0, 1.0, %v3562_v63  ;;  %v1660_v10 = vsel %vm211_vm1, 1.0, %v3562_v63 }
  0x9f   : > { %v3040_v51 = vsub.f32 %v1662_v9, %v1662_v9  ;;  %v3042_v55 = vsub.f32 %v1660_v10, %v1660_v10 }
  0xa0   : > { %v3044_v23 = vpop.permute.xlu1 %173  ;;  %v3046_v28 = vpop.permute.xlu0 %167 }
  0xa1   : > { %vm214_vm2 = vcmp.eq.s32.totalorder %v3044_v23, %v3022_v44  ;;  %vm212_vm3 = vcmp.eq.s32.totalorder %v3046_v28, %v3022_v44  ;;  %v358_v29 = vand.u32 4294901760, %v3042_v55  ;;  %v378_v8 = vand.u32 4294901760, %v3040_v51 }
  0xa2   : > { %v1663_v30 = vsel %vm214_vm2, 1.0, %v3562_v63  ;;  %v1661_v38 = vsel %vm212_vm3, 1.0, %v3562_v63 }
  0xa3   : > { %v3062_v17 = vsub.f32 %v1663_v30, %v1663_v30  ;;  %v3064_v16 = vsub.f32 %v1661_v38, %v1661_v38  ;;  %2122 = vmatprep.mubr.f32.mxu0 %v358_v29  ;;  %v359_v18 = vsub.f32 %v3042_v55, %v358_v29  ;;  %v379_v34 = vsub.f32 %v3040_v51, %v378_v8 }
  0xa4   : > { %v3067_v20 = vpop.permute.xlu1 %179  ;;  %v3069_v21 = vpop.permute.xlu0 %176 }
  0xa5   : > { %vm216_vm4 = vcmp.eq.s32.totalorder %v3067_v20, %v3022_v44  ;;  %vm215_vm5 = vcmp.eq.s32.totalorder %v3069_v21, %v3022_v44  ;;  %v360_v25 = vand.u32 4294901760, %v359_v18  ;;  %v368_v32 = vand.u32 4294901760, %v3064_v16 }
  0xa6   : > { %v1665_v31 = vsel %vm216_vm4, 1.0, %v3562_v63  ;;  %v1664_v42 = vsel %vm215_vm5, 1.0, %v3562_v63  ;;  %v388_v43 = vand.u32 4294901760, %v3062_v17  ;;  %v380_v29 = vand.u32 4294901760, %v379_v34 }
  0xa7   : > { %v3086_v41 = vsub.f32 %v1665_v31, %v1665_v31  ;;  %v3088_v22 = vsub.f32 %v1664_v42, %v1664_v42  ;;  %1954 = vmatprep.mubr.f32.mxu1 %v360_v25  ;;  %2123 = vmatmul.mubr.f32.vlgmr.msra.gmra.mrb[0].mxu0 %v368_v32  ;;  %v369_v58 = vsub.f32 %v3064_v16, %v368_v32 }
  0xa8   : > { %v3091_v46 = vpop.permute.xlu1 %185  ;;  %2125 = vmatprep.mubr.f32.mxu0 %v378_v8  ;;  %2389 = vmatpush3.bf16.msra.mxu0 %v2942_v52  ;;  %v3094_v62 = vpop.permute.xlu0 %182  ;;  %v389_v1 = vsub.f32 %v3062_v17, %v388_v43 }
  0xa9   : > { %vm218_vm6 = vcmp.eq.s32.totalorder %v3091_v46, %v3022_v44  ;;  %vm217_vm7 = vcmp.eq.s32.totalorder %v3094_v62, %v3022_v44  ;;  %v370_v39 = vand.u32 4294901760, %v369_v58  ;;  %2391 = vmatprep.subr.bf16.mxu0 %v2875_v56  ;;  %v398_v9 = vand.u32 4294901760, %v3088_v22 }
  0xaa   : > { %v1667_v52 = vsel %vm218_vm6, 1.0, %v3562_v63  ;;  %v1666_v10 = vsel %vm217_vm7, 1.0, %v3562_v63  ;;  %v408_v30 = vand.u32 4294901760, %v3086_v41  ;;  %v390_v31 = vand.u32 4294901760, %v389_v1 }
  0xab   : > { %v3112_v38 = vsub.f32 %v1667_v52, %v1667_v52  ;;  %v3114_v8 = vsub.f32 %v1666_v10, %v1666_v10  ;;  %1955 = vmatmul.mubr.f32.vlgmr.msra.gmra.mrb[0].mxu1 %v370_v39  ;;  %2126 = vmatmul.mubr.f32.gmra.mrb[2].mxu0 %v388_v43  ;;  %v399_v18 = vsub.f32 %v3088_v22, %v398_v9 }
  0xac   : > { %2293 = vmatpush3.bf16.msra.mxu1 %v2951_v57  ;;  %v3118_v25 = vpop.permute.xlu1 %191  ;;  %1957 = vmatprep.mubr.f32.mxu1 %v380_v29  ;;  %v3120_v32 = vpop.permute.xlu0 %188  ;;  %v409_v42 = vsub.f32 %v3086_v41, %v408_v30 }
  0xad   : > { %3571 = vst [vmem:[#allocation5_spill] sm:$0xff] %v3112_v38  ;;  %3572 = vst [vmem:[#allocation6_spill] sm:$0xff] %v3114_v8  ;;  %vm220_vm8 = vcmp.eq.s32.totalorder %v3118_v25, %v3022_v44  ;;  %2128 = vmatprep.mubr.f32.mxu0 %v398_v9  ;;  %2393 = vmatpush3.bf16.msra.mxu0 %v2875_v56  ;;  %vm219_vm9 = vcmp.eq.s32.totalorder %v3120_v32, %v3022_v44  ;;  %v400_v43 = vand.u32 4294901760, %v399_v18 }
  0xae   : > { %v418_v57 = vand.u32 4294901760, %v3114_v8  ;;  %v1669_v34 = vsel %vm220_vm8, 1.0, %v3562_v63  ;;  %v1668_v58 = vsel %vm219_vm9, 1.0, %v3562_v63  ;;  %2295 = vmatprep.subr.bf16.mxu1 %v2901_v7  ;;  %2395 = vmatprep.subr.bf16.mxu0 %v2922_v15  ;;  %v428_v56 = vand.u32 4294901760, %v3112_v38 }
  0xaf   : > { %v3140_v1 = vsub.f32 %v1669_v34, %v1669_v34  ;;  %v3142_v39 = vsub.f32 %v1668_v58, %v1668_v58  ;;  %1958 = vmatmul.mubr.f32.gmra.mrb[2].mxu1 %v390_v31  ;;  %2129 = vmatmul.mubr.f32.gmra.mrb[4].mxu0 %v408_v30  ;;  %v410_v29 = vand.u32 4294901760, %v409_v42 }
  0xb0   : > { %v419_v9 = vsub.f32 %v3114_v8, %v418_v57  ;;  %2297 = vmatpush3.bf16.msra.mxu1 %v2901_v7  ;;  %v3146_v52 = vpop.permute.xlu1 %197  ;;  %1960 = vmatprep.mubr.f32.mxu1 %v400_v43  ;;  %v3148_v10 = vpop.permute.xlu0 %194  ;;  %v429_v18 = vsub.f32 %v3112_v38, %v428_v56 }
  0xb1   : > { %3573 = vst [vmem:[#allocation7_spill] sm:$0xff] %v3140_v1  ;;  %3574 = vst [vmem:[#allocation8_spill] sm:$0xff] %v3142_v39  ;;  %vm222_vm10 = vcmp.eq.s32.totalorder %v3146_v52, %v3022_v44  ;;  %2131 = vmatprep.mubr.f32.mxu0 %v418_v57  ;;  %2397 = vmatpush3.bf16.msra.mxu0 %v2922_v15  ;;  %vm221_vm11 = vcmp.eq.s32.totalorder %v3148_v10, %v3022_v44  ;;  %v438_v7 = vand.u32 4294901760, %v3142_v39 }
  0xb2   : > { %v420_v30 = vand.u32 4294901760, %v419_v9  ;;  %v1671_v31 = vsel %vm222_vm10, 1.0, %v3562_v63  ;;  %v1670_v42 = vsel %vm221_vm11, 1.0, %v3562_v63  ;;  %2299 = vmatprep.subr.bf16.mxu1 %v2944_v54  ;;  %2399 = vmatprep.subr.bf16.mxu0 %v2931_v33  ;;  %v448_v15 = vand.u32 4294901760, %v3140_v1 }
  0xb3   : > { %v3168_v43 = vsub.f32 %v1671_v31, %v1671_v31  ;;  %v3170_v57 = vsub.f32 %v1670_v42, %v1670_v42  ;;  %1961 = vmatmul.mubr.f32.gmra.mrb[4].mxu1 %v410_v29  ;;  %2132 = vmatmul.mubr.f32.gmra.mrb[6].mxu0 %v428_v56  ;;  %v439_v34 = vsub.f32 %v3142_v39, %v438_v7  ;;  %v430_v63 = vand.u32 4294901760, %v429_v18 }
  0xb4   : > { %2301 = vmatpush3.bf16.msra.mxu1 %v2944_v54  ;;  %v3174_v58 = vpop.permute.xlu1 %203  ;;  %1963 = vmatprep.mubr.f32.mxu1 %v420_v30  ;;  %v3176_v9 = vpop.permute.xlu0 %200  ;;  %v449_v38 = vsub.f32 %v3140_v1, %v448_v15  ;;  %v3576_v29 = vmov 0.0  }
  0xb5   : > { %3575 = vst [vmem:[#allocation9_spill] sm:$0xff] %v3168_v43  ;;  %vm224_vm12 = vcmp.eq.s32.totalorder %v3174_v58, %v3022_v44  ;;  %2134 = vmatprep.mubr.f32.mxu0 %v438_v7  ;;  %2401 = vmatpush3.bf16.msra.mxu0 %v2931_v33  ;;  %vm223_vm13 = vcmp.eq.s32.totalorder %v3176_v9, %v3022_v44  ;;  %v440_v56 = vand.u32 4294901760, %v439_v34  ;;  %v458_v54 = vand.u32 4294901760, %v3170_v57 }
  0xb6   : > { %v1673_v30 = vsel %vm224_vm12, 1.0, %v3576_v29  ;;  %v1672_v18 = vsel %vm223_vm13, 1.0, %v3576_v29  ;;  %2303 = vmatprep.subr.bf16.mxu1 %v2956_v0  ;;  %2403 = vmatprep.subr.bf16.mxu0 %v2967_v2  ;;  %v468_v33 = vand.u32 4294901760, %v3168_v43  ;;  %v450_v39 = vand.u32 4294901760, %v449_v38 }
  0xb7   : > { %v3196_v7 = vsub.f32 %v1673_v30, %v1673_v30  ;;  %v3198_v31 = vsub.f32 %v1672_v18, %v1672_v18  ;;  %1964 = vmatmul.mubr.f32.gmra.mrb[6].mxu1 %v430_v63  ;;  %2135 = vmatmul.mubr.f32.gmra.mrb[8].mxu0 %v448_v15  ;;  %v459_v42 = vsub.f32 %v3170_v57, %v458_v54 }
  0xb8   : > { %2305 = vmatpush3.bf16.msra.mxu1 %v2956_v0  ;;  %v3202_v34 = vpop.permute.xlu1 %209  ;;  %1966 = vmatprep.mubr.f32.mxu1 %v440_v56  ;;  %v3204_v1 = vpop.permute.xlu0 %206  ;;  %v469_v8 = vsub.f32 %v3168_v43, %v468_v33 }
  0xb9   : > { %vm226_vm14 = vcmp.eq.s32.totalorder %v3202_v34, %v3022_v44  ;;  %2137 = vmatprep.mubr.f32.mxu0 %v458_v54  ;;  %2405 = vmatpush3.bf16.msra.mxu0 %v2967_v2  ;;  %vm225_vm15 = vcmp.eq.s32.totalorder %v3204_v1, %v3022_v44  ;;  %v460_v63 = vand.u32 4294901760, %v459_v42  ;;  %v478_v0 = vand.u32 4294901760, %v3198_v31 }
  0xba   : > { %v1675_v15 = vsel %vm226_vm14, 1.0, %v3576_v29  ;;  %v1674_v38 = vsel %vm225_vm15, 1.0, %v3576_v29  ;;  %2307 = vmatprep.subr.bf16.mxu1 %v2976_v13  ;;  %2407 = vmatprep.subr.bf16.mxu0 %v2971_v37  ;;  %v488_v2 = vand.u32 4294901760, %v3196_v7  ;;  %v470_v18 = vand.u32 4294901760, %v469_v8 }
  0xbb   : > { %v3224_v56 = vsub.f32 %v1675_v15, %v1675_v15  ;;  %v3226_v54 = vsub.f32 %v1674_v38, %v1674_v38  ;;  %1967 = vmatmul.mubr.f32.gmra.mrb[8].mxu1 %v450_v39  ;;  %2138 = vmatmul.mubr.f32.gmra.mrb[10].mxu0 %v468_v33  ;;  %v479_v30 = vsub.f32 %v3198_v31, %v478_v0 }
  0xbc   : > { %2309 = vmatpush3.bf16.msra.mxu1 %v2976_v13  ;;  %1969 = vmatprep.mubr.f32.mxu1 %v460_v63  ;;  %v489_v43 = vsub.f32 %v3196_v7, %v488_v2 }
  0xbd   : > { %2140 = vmatprep.mubr.f32.mxu0 %v478_v0  ;;  %2409 = vmatpush3.bf16.msra.mxu0 %v2971_v37  ;;  %v480_v29 = vand.u32 4294901760, %v479_v30  ;;  %v498_v42 = vand.u32 4294901760, %v3226_v54  ;;  %v508_v15 = vand.u32 4294901760, %v3224_v56 }
  0xbe   : > { %2311 = vmatprep.subr.bf16.mxu1 %v2981_v24  ;;  %2411 = vmatprep.subr.bf16.mxu0 %v2989_v40  ;;  %v490_v37 = vand.u32 4294901760, %v489_v43 }
  0xbf   : > { %1970 = vmatmul.mubr.f32.gmra.mrb[10].mxu1 %v470_v18  ;;  %2141 = vmatmul.mubr.f32.gmra.mrb[12].mxu0 %v488_v2  ;;  %v499_v13 = vsub.f32 %v3226_v54, %v498_v42  ;;  %v509_v39 = vsub.f32 %v3224_v56, %v508_v15 }
  0xc0   : > { %2313 = vmatpush3.bf16.msra.mxu1 %v2981_v24  ;;  %1972 = vmatprep.mubr.f32.mxu1 %v480_v29  ;;  %v2642_v24 = vmov 1.0  }
  0xc1   : > { %2143 = vmatprep.mubr.f32.mxu0 %v498_v42  ;;  %2413 = vmatpush3.bf16.msra.mxu0 %v2989_v40  ;;  %v500_v8 = vand.u32 4294901760, %v499_v13  ;;  %v510_v40 = vand.u32 4294901760, %v509_v39 }
  0xc2   : > { %2315 = vmatprep.subr.bf16.mxu1 %v2993_v50  ;;  %2415 = vmatprep.subr.bf16.mxu0 %v2991_v27 }
  0xc3   : > { %1973 = vmatmul.mubr.f32.gmra.mrb[12].mxu1 %v490_v37  ;;  %2144 = vmatmul.mubr.f32.gmra.mrb[14].mxu0 %v508_v15 }
  0xc4   : > { %2317 = vmatpush3.bf16.msra.mxu1 %v2993_v50  ;;  %1975 = vmatprep.mubr.f32.mxu1 %v500_v8 }
  0xc5   : > { %2417 = vmatpush3.bf16.msra.mxu0 %v2991_v27  ;;  %2178 = vmatprep.mubr.msk.f32.mxu0 %vm211_vm1, %v2642_v24 }
  0xc6   : > { %2319 = vmatprep.subr.bf16.mxu1 %v2995_v48  ;;  %2419 = vmatprep.subr.bf16.mxu0 %v2735_v11 }
  0xc7   : > { %1976 = vmatmul.mubr.f32.gmra.mrb[14].mxu1 %v510_v40 }
  0xc8   : > { %2321 = vmatpush3.bf16.msra.mxu1 %v2995_v48  ;;  %2179 = vmatmul.mubr.msk.f32.vlgmr.msra.gmra.mrb[0].mxu0 %vm212_vm3, %v2642_v24 }
  0xc9   : > { %2010 = vmatprep.mubr.msk.f32.mxu1 %vm211_vm1, %v2642_v24  ;;  %2181 = vmatprep.mubr.msk.f32.mxu0 %vm213_vm0, %v2642_v24 }
  0xca   : > { %2421 = vmatpush3.bf16.msra.mxu0 %v2735_v11  ;;  %2323 = vmatprep.subr.bf16.mxu1 %v2999_v49  ;;  %v3577_v11 = vld [vmem:[#allocation6_spill] sm:$0xff] }
  0xcb   : > { %2011 = vmatmul.mubr.msk.f32.vlgmr.msra.gmra.mrb[0].mxu1 %vm212_vm3, %v2642_v24  ;;  %2423 = vmatprep.subr.bf16.mxu0 %v2739_v14 }
  0xcc   : > { %2325 = vmatpush3.bf16.msra.mxu1 %v2999_v49  ;;  %2182 = vmatmul.mubr.msk.f32.gmra.mrb[2].mxu0 %vm214_vm2, %v2642_v24 }
  0xcd   : > { %2013 = vmatprep.mubr.msk.f32.mxu1 %vm213_vm0, %v2642_v24  ;;  %2184 = vmatprep.mubr.msk.f32.mxu0 %vm215_vm5, %v2642_v24 }
  0xce   : > { %2425 = vmatpush3.bf16.msra.mxu0 %v2739_v14  ;;  %2327 = vmatprep.subr.bf16.mxu1 %v3003_v60  ;;  %v3578_v14 = vld [vmem:[#allocation5_spill] sm:$0xff] }
  0xcf   : > { %2014 = vmatmul.mubr.msk.f32.gmra.mrb[2].mxu1 %vm214_vm2, %v2642_v24  ;;  %2427 = vmatprep.subr.bf16.mxu0 %v2768_v19 }
  0xd0   : > { %2329 = vmatpush3.bf16.msra.mxu1 %v3003_v60  ;;  %2185 = vmatmul.mubr.msk.f32.gmra.mrb[4].mxu0 %vm216_vm4, %v2642_v24 }
  0xd1   : > { %2016 = vmatprep.mubr.msk.f32.mxu1 %vm215_vm5, %v2642_v24  ;;  %2187 = vmatprep.mubr.msk.f32.mxu0 %vm217_vm7, %v2642_v24 }
  0xd2   : > { %2429 = vmatpush3.bf16.msra.mxu0 %v2768_v19  ;;  %2331 = vmatprep.subr.bf16.mxu1 %v3007_v61  ;;  %v3579_v19 = vld [vmem:[#allocation8_spill] sm:$0xff] }
  0xd3   : > { %2017 = vmatmul.mubr.msk.f32.gmra.mrb[4].mxu1 %vm216_vm4, %v2642_v24  ;;  %2431 = vmatprep.subr.bf16.mxu0 %v2792_v26 }
  0xd4   : > { %2333 = vmatpush3.bf16.msra.mxu1 %v3007_v61  ;;  %2188 = vmatmul.mubr.msk.f32.gmra.mrb[6].mxu0 %vm218_vm6, %v2642_v24 }
  0xd5   : > { %2019 = vmatprep.mubr.msk.f32.mxu1 %vm217_vm7, %v2642_v24  ;;  %2190 = vmatprep.mubr.msk.f32.mxu0 %vm219_vm9, %v2642_v24 }
  0xd6   : > { %2433 = vmatpush3.bf16.msra.mxu0 %v2792_v26  ;;  %2335 = vmatprep.subr.bf16.mxu1 %v3011_v3  ;;  %v3580_v26 = vld [vmem:[#allocation7_spill] sm:$0xff] }
  0xd7   : > { %2020 = vmatmul.mubr.msk.f32.gmra.mrb[6].mxu1 %vm218_vm6, %v2642_v24  ;;  %2435 = vmatprep.subr.bf16.mxu0 %v2828_v36 }
  0xd8   : > { %2337 = vmatpush3.bf16.msra.mxu1 %v3011_v3  ;;  %2191 = vmatmul.mubr.msk.f32.gmra.mrb[8].mxu0 %vm220_vm8, %v2642_v24 }
  0xd9   : > { %2022 = vmatprep.mubr.msk.f32.mxu1 %vm219_vm9, %v2642_v24  ;;  %2193 = vmatprep.mubr.msk.f32.mxu0 %vm221_vm11, %v2642_v24 }
  0xda   : > { %2437 = vmatpush3.bf16.msra.mxu0 %v2828_v36  ;;  %2339 = vmatprep.subr.bf16.mxu1 %v3014_v4  ;;  %v3581_v36 = vld [vmem:[#allocation9_spill] sm:$0xff] }
  0xdb   : > { %2023 = vmatmul.mubr.msk.f32.gmra.mrb[8].mxu1 %vm220_vm8, %v2642_v24  ;;  %2439 = vmatprep.subr.bf16.mxu0 %v2852_v47 }
  0xdc   : > { %2341 = vmatpush3.bf16.msra.mxu1 %v3014_v4  ;;  %2194 = vmatmul.mubr.msk.f32.gmra.mrb[10].mxu0 %vm222_vm10, %v2642_v24 }
  0xdd   : > { %2025 = vmatprep.mubr.msk.f32.mxu1 %vm221_vm11, %v2642_v24  ;;  %2196 = vmatprep.mubr.msk.f32.mxu0 %vm223_vm13, %v2642_v24 }
  0xde   : > { %2441 = vmatpush3.bf16.msra.mxu0 %v2852_v47  ;;  %2343 = vmatprep.subr.bf16.mxu1 %v3016_v5 }
  0xdf   : > { %2026 = vmatmul.mubr.msk.f32.gmra.mrb[10].mxu1 %vm222_vm10, %v2642_v24  ;;  %2443 = vmatprep.subr.bf16.mxu0 %v2871_v53 }
  0xe0   : > { %2345 = vmatpush3.bf16.msra.mxu1 %v3016_v5  ;;  %2197 = vmatmul.mubr.msk.f32.gmra.mrb[12].mxu0 %vm224_vm12, %v2642_v24 }
  0xe1   : > { %2028 = vmatprep.mubr.msk.f32.mxu1 %vm223_vm13, %v2642_v24  ;;  %2199 = vmatprep.mubr.msk.f32.mxu0 %vm225_vm15, %v2642_v24 }
  0xe2   : > { %2445 = vmatpush3.bf16.msra.mxu0 %v2871_v53  ;;  %2347 = vmatprep.subr.bf16.mxu1 %v3018_v6 }
  0xe3   : > { %2029 = vmatmul.mubr.msk.f32.gmra.mrb[12].mxu1 %vm224_vm12, %v2642_v24  ;;  %2447 = vmatprep.subr.bf16.mxu0 %v2920_v12 }
  0xe4   : > { %2349 = vmatpush3.bf16.msra.mxu1 %v3018_v6  ;;  %2200 = vmatmul.mubr.msk.f32.gmra.mrb[14].mxu0 %vm226_vm14, %v2642_v24 }
  0xe5   : > { %2031 = vmatprep.mubr.msk.f32.mxu1 %vm225_vm15, %v2642_v24  ;;  %2234 = vmatprep.mubr.msk.f32.mxu0 %vm211_vm1, %v2642_v24 }
  0xe6   : > { %2449 = vmatpush3.bf16.msra.mxu0 %v2920_v12  ;;  %2351 = vmatprep.subr.bf16.mxu1 %v3020_v35 }
  0xe7   : > { %2032 = vmatmul.mubr.msk.f32.gmra.mrb[14].mxu1 %vm226_vm14, %v2642_v24 }
  0xe8   : > { %2353 = vmatpush3.bf16.msra.mxu1 %v3020_v35  ;;  %2066 = vmatprep.mubr.f32.mxu1 %v3042_v55 }
  0xe9   : > { %2235 = vmatmul.mubr.msk.f32.vlgmr.msra.gmra.mrb[0].mxu0 %vm212_vm3, %v2642_v24 }
  0xea   : > { %2237 = vmatprep.mubr.msk.f32.mxu0 %vm213_vm0, %v2642_v24 }
  0xeb   : > { %2067 = vmatmul.mubr.f32.vlgmr.msra.gmra.mrb[0].mxu1 %v3064_v16 }
  0xec   : > { %2069 = vmatprep.mubr.f32.mxu1 %v3040_v51 }
  0xed   : > { %2238 = vmatmul.mubr.msk.f32.gmra.mrb[2].mxu0 %vm214_vm2, %v2642_v24 }
  0xee   : > { %2240 = vmatprep.mubr.msk.f32.mxu0 %vm215_vm5, %v2642_v24 }
  0xef   : > { %2070 = vmatmul.mubr.f32.gmra.mrb[2].mxu1 %v3062_v17 }
  0xf0   : > { %2072 = vmatprep.mubr.f32.mxu1 %v3088_v22 }
  0xf1   : > { %2241 = vmatmul.mubr.msk.f32.gmra.mrb[4].mxu0 %vm216_vm4, %v2642_v24 }
  0xf2   : > { %2243 = vmatprep.mubr.msk.f32.mxu0 %vm217_vm7, %v2642_v24 }
  0xf3   : > { %2073 = vmatmul.mubr.f32.gmra.mrb[4].mxu1 %v3086_v41 }
  0xf4   : > { %2075 = vmatprep.mubr.f32.mxu1 %v3577_v11 }
  0xf5   : > { %2244 = vmatmul.mubr.msk.f32.gmra.mrb[6].mxu0 %vm218_vm6, %v2642_v24 }
  0xf6   : > { %2246 = vmatprep.mubr.msk.f32.mxu0 %vm219_vm9, %v2642_v24 }
  0xf7   : > { %2076 = vmatmul.mubr.f32.gmra.mrb[6].mxu1 %v3578_v14 }
  0xf8   : > { %2078 = vmatprep.mubr.f32.mxu1 %v3579_v19 }
  0xf9   : > { %2247 = vmatmul.mubr.msk.f32.gmra.mrb[8].mxu0 %vm220_vm8, %v2642_v24 }
  0xfa   : > { %2249 = vmatprep.mubr.msk.f32.mxu0 %vm221_vm11, %v2642_v24 }
  0xfb   : > { %2079 = vmatmul.mubr.f32.gmra.mrb[8].mxu1 %v3580_v26 }
  0xfc   : > { %2081 = vmatprep.mubr.f32.mxu1 %v3170_v57 }
  0xfd   : > { %2250 = vmatmul.mubr.msk.f32.gmra.mrb[10].mxu0 %vm222_vm10, %v2642_v24 }
  0xfe   : > { %2252 = vmatprep.mubr.msk.f32.mxu0 %vm223_vm13, %v2642_v24 }
  0xff   : > { %2082 = vmatmul.mubr.f32.gmra.mrb[10].mxu1 %v3581_v36 }
 0x100   : > { %2084 = vmatprep.mubr.f32.mxu1 %v3198_v31 }
 0x101   : > { %2253 = vmatmul.mubr.msk.f32.gmra.mrb[12].mxu0 %vm224_vm12, %v2642_v24 }
 0x102   : > { %2255 = vmatprep.mubr.msk.f32.mxu0 %vm225_vm15, %v2642_v24 }
 0x103   : > { %2085 = vmatmul.mubr.f32.gmra.mrb[12].mxu1 %v3196_v7 }
 0x104   : > { %2087 = vmatprep.mubr.f32.mxu1 %v3226_v54 }
 0x105   : > { %2256 = vmatmul.mubr.msk.f32.gmra.mrb[14].mxu0 %vm226_vm14, %v2642_v24 }
 0x107   : > { %2088 = vmatmul.mubr.f32.gmra.mrb[14].mxu1 %v3224_v56 }
 0x1bc   : > { %v2236_v47 = vpop.f32.mrb[0].mxu0 }
 0x1bd   : > { %v1467_v53 = vpop.f32.mrb[1].mxu0 }
 0x1be   : > { %v2068_v12 = vpop.f32.mrb[0].mxu1 }
 0x1bf   : > { %v2450_v27 = vadd.f32 %v2236_v47, %v2068_v12  ;;  %v857_v50 = vpop.f32.mrb[1].mxu1 }
 0x1c0   : > { %v2239_v48 = vpop.f32.mrb[2].mxu0  ;;  %v2451_v49 = vadd.f32 %v1467_v53, %v857_v50 }
 0x1c1   : > { %1562 = vst [vmem:[%s3489_s23 + $0x8] sm:$0xff] %v2450_v27  ;;  %v1479_v60 = vpop.f32.mrb[3].mxu0 }
 0x1c2   : > { %1561 = vst [vmem:[%s3489_s23] sm:$0xff] %v2451_v49  ;;  %v2071_v61 = vpop.f32.mrb[2].mxu1 }
 0x1c3   : > { %v2452_v3 = vadd.f32 %v2239_v48, %v2071_v61  ;;  %v871_v4 = vpop.f32.mrb[3].mxu1 }
 0x1c4   : > { %v2242_v5 = vpop.f32.mrb[4].mxu0  ;;  %v2453_v6 = vadd.f32 %v1479_v60, %v871_v4 }
 0x1c5   : > { %1564 = vst [vmem:[%s3489_s23 + $0x18] sm:$0xff] %v2452_v3  ;;  %v1491_v35 = vpop.f32.mrb[5].mxu0 }
 0x1c6   : > { %1563 = vst [vmem:[%s3489_s23 + $0x10] sm:$0xff] %v2453_v6  ;;  %v2074_v44 = vpop.f32.mrb[4].mxu1 }
 0x1c7   : > { %v2454_v45 = vadd.f32 %v2242_v5, %v2074_v44  ;;  %v885_v59 = vpop.f32.mrb[5].mxu1 }
 0x1c8   : > { %v2245_v51 = vpop.f32.mrb[6].mxu0  ;;  %v2455_v55 = vadd.f32 %v1491_v35, %v885_v59 }
 0x1c9   : > { %1566 = vst [vmem:[%s3489_s23 + $0x28] sm:$0xff] %v2454_v45  ;;  %v1503_v23 = vpop.f32.mrb[7].mxu0 }
 0x1ca   : > { %1565 = vst [vmem:[%s3489_s23 + $0x20] sm:$0xff] %v2455_v55  ;;  %v2077_v28 = vpop.f32.mrb[6].mxu1 }
 0x1cb   : > { %v2456_v17 = vadd.f32 %v2245_v51, %v2077_v28  ;;  %v899_v16 = vpop.f32.mrb[7].mxu1 }
 0x1cc   : > { %v2248_v20 = vpop.f32.mrb[8].mxu0  ;;  %v2457_v21 = vadd.f32 %v1503_v23, %v899_v16 }
 0x1cd   : > { %1568 = vst [vmem:[%s3489_s23 + $0x38] sm:$0xff] %v2456_v17  ;;  %v1515_v41 = vpop.f32.mrb[9].mxu0 }
 0x1ce   : > { %1567 = vst [vmem:[%s3489_s23 + $0x30] sm:$0xff] %v2457_v21  ;;  %v2080_v22 = vpop.f32.mrb[8].mxu1 }
 0x1cf   : > { %v2458_v46 = vadd.f32 %v2248_v20, %v2080_v22  ;;  %v913_v62 = vpop.f32.mrb[9].mxu1 }
 0x1d0   : > { %v2251_v25 = vpop.f32.mrb[10].mxu0  ;;  %v2459_v32 = vadd.f32 %v1515_v41, %v913_v62 }
 0x1d1   : > { %1570 = vst [vmem:[%s3489_s23 + $0x48] sm:$0xff] %v2458_v46  ;;  %v1527_v1 = vpop.f32.mrb[11].mxu0 }
 0x1d2   : > { %1569 = vst [vmem:[%s3489_s23 + $0x40] sm:$0xff] %v2459_v32  ;;  %v2083_v52 = vpop.f32.mrb[10].mxu1 }
 0x1d3   : > { %v2460_v10 = vadd.f32 %v2251_v25, %v2083_v52  ;;  %v927_v43 = vpop.f32.mrb[11].mxu1 }
 0x1d4   : > { %v2254_v57 = vpop.f32.mrb[12].mxu0  ;;  %v2461_v58 = vadd.f32 %v1527_v1, %v927_v43 }
 0x1d5   : > { %1572 = vst [vmem:[%s3489_s23 + $0x58] sm:$0xff] %v2460_v10  ;;  %v1539_v9 = vpop.f32.mrb[13].mxu0 }
 0x1d6   : > { %1571 = vst [vmem:[%s3489_s23 + $0x50] sm:$0xff] %v2461_v58  ;;  %v2086_v33 = vpop.f32.mrb[12].mxu1 }
 0x1d7   : > { %v2462_v7 = vadd.f32 %v2254_v57, %v2086_v33  ;;  %v941_v31 = vpop.f32.mrb[13].mxu1 }
 0x1d8   : > { %v2257_v34 = vpop.f32.mrb[14].mxu0  ;;  %v2463_v63 = vadd.f32 %v1539_v9, %v941_v31 }
 0x1d9   : > { %1574 = vst [vmem:[%s3489_s23 + $0x68] sm:$0xff] %v2462_v7  ;;  %v1551_v0 = vpop.f32.mrb[15].mxu0 }
 0x1da   : > { %1573 = vst [vmem:[%s3489_s23 + $0x60] sm:$0xff] %v2463_v63  ;;  %v2089_v38 = vpop.f32.mrb[14].mxu1 }
 0x1db   : > { %v2464_v2 = vadd.f32 %v2257_v34, %v2089_v38  ;;  %v955_v56 = vpop.f32.mrb[15].mxu1 }
 0x1dc   : > { %v2465_v54 = vadd.f32 %v1551_v0, %v955_v56 }
 0x1dd   : > { %1576 = vst [vmem:[%s3489_s23 + $0x78] sm:$0xff] %v2464_v2 }
 0x1de   : > { %1575 = vst [vmem:[%s3489_s23 + $0x70] sm:$0xff] %v2465_v54 }
 0x1df   : > { %2589 = shalt.err (!%p2586_p3)
}
 0x1e0   : > { %s2590_s4 = scalar_lea.hbm %s3510_s27, 2048  ;;  %s2594_s7 = scalar_lea.hbm %s3561_s2, 4096 }
 0x1e1   : > { %p2591_p4 = scmp.ne.s32.totalorder %s3510_s27, %s2590_s4  ;;  %p2595_p9 = scmp.lt.u32.totalorder %s3510_s27, %s3561_s2 }
 0x1e2   : > { %p2596_p10 = scmp.lt.u32.totalorder %s2594_s7, %s2590_s4  ;;  %p2598_p12 = scmp.lt.u32.totalorder %s2590_s4, %s3510_s27 }
 0x1e3   : > { %p2592_p7 = pnand %p2591_p4, %p2699_p5 }
 0x1e4   : > { %p2597_p11 = por %p2596_p10, %p2595_p9 }
 0x1e5   : > { %p2593_p8 = pneg %p2592_p7 }
 0x1e6   : > { %p2599_p13 = por %p2598_p12, %p2597_p11 }
 0x1e8   : > { %p2600_p0 = pnand %p2599_p13, %p2593_p8 }
 0x1ea   : > { %2603 = shalt.err (!%p2600_p0)
}
 0x1eb   : > { %s2644_s16 = smov 128   ;;  %s2645_s17 = smov 8  }
 0x1ec   : > { %2530 = dma.vmem_to_hbm [thread:$0]  (%p2699_p5), %s3512_s24, 2048, %s3510_s27, %s3518_s13, %s2644_s16, %s2644_s16, %s2645_s17  }
 0x1ed PF: > { %p2536_p1 = scmp.ge.s32.totalorder %s2638_s12, 2  ;;  %s1606_s22 = sand.u32 1, %s2626_s9  }
 0x1ee   : > { %s1607_s23 = scalar_lea.sflag [#allocation3], %s1606_s22 }
 0x1ef   : > { %p2533_p2 = pnand %p2536_p1, %p2703_p6 }
 0x1f1   : > { %2621 = dma.done.wait (!%p2533_p2), %s1607_s23, 2048  }
 0x1f2   : > { %2623 = vsyncadd (!%p2533_p2), %s1607_s23, 4294965248  ;;  %p12_p3 = scmp.ge.s32.totalorder %s2686_s15, 4   ;;  %s3582_s9 = smov %s2630_s10 }
 0x1f3   : > { %s3583_s10 = smov %s2634_s11  ;;  %s3584_s11 = smov %s2697_s18 }
 0x1f4   : > { %s3585_s12 = smov %s2686_s15  ;;  %14 = sbr.rel (!%p12_p3) target bundleno = 3 (0x3), region = 63 }
 0x1fb   :  { %1612 = vsyncpa [#allocation3], 1 }
 0x1fc   :  { %1614 = vsyncpa [#allocation3 + $0x1], 1 }

</bundles_post_ra>
